<compile_context>
chip_gen: v5e
topology: v5e:2x2
jax: 0.10.0
libtpu: 0.0.40
codegen_flags: <defaults>
</compile_context>

<pallas_src>
import functools

import jax
import jax.numpy as jnp
from jax.experimental import pallas as pl
from jax.experimental.pallas import tpu as pltpu


# -----------------------------------------------------------------------------
# Kernel
# -----------------------------------------------------------------------------
def logreg_kernel(x_ref, w_ref, b_ref, o_ref, acc_ref, *, num_classes, padded_classes):
    """Grid = (batch tiles, K tiles).  Accumulate logits over K, softmax at the end."""
    k = pl.program_id(1)

    @pl.when(k == 0)
    def _init():
        acc_ref[...] = jnp.zeros_like(acc_ref)

    acc_ref[...] += jnp.dot(x_ref[...], w_ref[...],
                            preferred_element_type=jnp.float32)      # (TB, Cp)

    @pl.when(k == pl.num_programs(1) - 1)
    def _finalize():
        logits = acc_ref[...] + b_ref[...].astype(jnp.float32)       # (TB, Cp)
        if num_classes < padded_classes:
            # Mask padded class columns (dtype-safe; avoids the -1e30 bias trick).
            col = jax.lax.broadcasted_iota(jnp.int32, logits.shape, 1)
            logits = jnp.where(col < num_classes, logits,
                               jnp.finfo(jnp.float32).min)

        m = jnp.max(logits, axis=1, keepdims=True)
        e = jnp.exp(logits - m)                  # padded columns underflow to exactly 0
        denom = jnp.sum(e, axis=1, keepdims=True)

        # EUP approximate reciprocal + one Newton-Raphson step -> ~f32 accuracy.
        r = pl.reciprocal(denom, approx=True)
        r = r * (2.0 - denom * r)

        probs = e * r
        # Un-padded (masked) store: writes only the real C columns back to HBM.
        o_ref[...] = probs[:, :num_classes].astype(o_ref.dtype)


# -----------------------------------------------------------------------------
# Parameter prep (model-load time)
# -----------------------------------------------------------------------------
def prepare_params(weight, bias, *, lane=128, weight_dtype=None):
    """weight: (C, D) nn.Linear layout; bias: (C,).

    Returns weight transposed to (D, Cp) and bias as (1, Cp), class dim padded to a
    multiple of `lane` (zero padding; the kernel masks padded classes explicitly).
    `weight_dtype` optionally casts W for HBM-bandwidth savings (e.g. jnp.bfloat16);
    the matmul still accumulates in f32.
    NOTE: lane=256 only pays off for compute-bound configs on v6e/v7x (256-wide MXU);
    keep 128 in the memory-bound regime.
    """
    C, D = weight.shape
    Cp = ((C + lane - 1) // lane) * lane
    w_t = weight.T
    if weight_dtype is not None:
        w_t = w_t.astype(weight_dtype)
    w_pad = jnp.zeros((D, Cp), w_t.dtype).at[:, :C].set(w_t)
    b_pad = jnp.zeros((1, Cp), jnp.float32).at[0, :C].set(bias.astype(jnp.float32))
    return w_pad, b_pad


# -----------------------------------------------------------------------------
# VMEM budgeting / tiling
# -----------------------------------------------------------------------------
def _vmem_limits():
    """Per-generation scoped-VMEM limit and the (smaller) tile-sizing budget."""
    try:
        phys = int(pltpu.get_tpu_info().vmem_capacity_bytes)
    except Exception:
        phys = 64 * 1024 * 1024                 # conservative (v7x per-TC size)
    if phys >= 128 * 1024 * 1024:               # v5e / v6e: 128 MiB physical
        limit = 64 * 1024 * 1024
    else:                                       # v7x: 64 MiB per TC -> leave headroom
        limit = 44 * 1024 * 1024
    budget = (limit * 3) // 4                   # headroom for compiler scratch / fallback
    return limit, budget


def _choose_tiling(B, D, C, Cp, *, x_itemsize, w_itemsize, vmem_budget):
    """Pick (TB, TK): batch tile and feature (K) tile."""
    def round_up8(n):
        return ((n + 7) // 8) * 8

    # --- K tiling: only when the resident weight slab threatens the budget, and only
    # with TK | D so the MXU accumulation never sees out-of-bounds garbage.
    TK = D
    if D * Cp * w_itemsize > vmem_budget // 3 and D % 128 == 0:
        for cand in (4096, 2048, 1024, 512, 256, 128):
            if cand < D and D % cand == 0 and 2 * cand * Cp * w_itemsize <= vmem_budget // 3:
                TK = cand
                break

    n_w_buf = 1 if TK == D else 2               # constant weight block -> single buffer
    w_bytes = n_w_buf * TK * Cp * w_itemsize
    b_bytes = 2 * 8 * Cp * 4

    # Per batch row: double-buffered x and out blocks, f32 accumulator scratch, and
    # ~3 (TB, Cp) f32 kernel-body temporaries (logits / e / probs).
    per_row = (2 * TK * x_itemsize
               + 2 * C * 4
               + Cp * 4
               + 3 * Cp * 4)
    avail = vmem_budget - w_bytes - b_bytes
    tb = max(8, avail // per_row)
    tb = (tb // 8) * 8
    TB = B if B <= tb else int(tb)              # full-extent block always legal

    # Give megacore parts (v7x: 2 TCs/chip) at least two "parallel" grid steps.
    if B > 8:
        TB = min(TB, max(8, round_up8(-(-B // 2))))
    return int(TB), int(TK)


# -----------------------------------------------------------------------------
# Forward wrapper
# -----------------------------------------------------------------------------
def logistic_regression_forward(x, w_pad, b_pad, num_classes, *, input_dtype=None):
    """x: (B, D); w_pad: (D, Cp); b_pad: (1, Cp) f32.  Returns softmax probs (B, C) f32."""
    if input_dtype is not None:                 # e.g. jnp.bfloat16 storage path
        x = x.astype(input_dtype)
    B, D = x.shape
    Dw, Cp = w_pad.shape
    assert Dw == D
    C = int(num_classes)

    vmem_limit, vmem_budget = _vmem_limits()
    TB, TK = _choose_tiling(B, D, C, Cp,
                            x_itemsize=x.dtype.itemsize,
                            w_itemsize=w_pad.dtype.itemsize,
                            vmem_budget=vmem_budget)
    nb = pl.cdiv(B, TB)
    nk = D // TK

    kernel = functools.partial(logreg_kernel, num_classes=C, padded_classes=Cp)

    cost = pl.CostEstimate(
        flops=2 * B * D * Cp,
        transcendentals=B * Cp,
        bytes_accessed=(B * D * x.dtype.itemsize
                        + D * Cp * w_pad.dtype.itemsize
                        + B * C * 4),
    )

    def build(single_buffer_params):
        w_mode, b_mode = {}, {}
        if single_buffer_params and hasattr(pl, "Buffered"):
            if nk == 1:                          # weight block constant across the grid
                w_mode = dict(pipeline_mode=pl.Buffered(1))
            b_mode = dict(pipeline_mode=pl.Buffered(1))
        return pl.pallas_call(
            kernel,
            out_shape=jax.ShapeDtypeStruct((B, C), jnp.float32),
            grid_spec=pltpu.PrefetchScalarGridSpec(
                num_scalar_prefetch=0,
                grid=(nb, nk),
                in_specs=[
                    pl.BlockSpec((TB, TK), lambda i, k: (i, k)),           # x
                    pl.BlockSpec((TK, Cp), lambda i, k: (k, 0), **w_mode), # weight
                    pl.BlockSpec((1, Cp), lambda i, k: (0, 0), **b_mode),  # bias
                ],
                out_specs=pl.BlockSpec((TB, C), lambda i, k: (i, 0)),
                scratch_shapes=[pltpu.VMEM((TB, Cp), jnp.float32)],        # logits acc
            ),
            compiler_params=pltpu.CompilerParams(
                dimension_semantics=("parallel", "arbitrary"),
                vmem_limit_bytes=vmem_limit,
            ),
            cost_estimate=cost,
        )

    try:
        out = build(True)(x, w_pad, b_pad)
    except Exception:
        # Single-buffer resident params not supported on this build; fall back to the
        # default double-buffered specs (identical semantics, slightly more VMEM).
        out = build(False)(x, w_pad, b_pad)
    return out


# -----------------------------------------------------------------------------
# Demo / correctness check
# -----------------------------------------------------------------------------
if __name__ == "__main__":
    key = jax.random.PRNGKey(0)

    def make_case(key, batch, input_size, num_classes):
        kx, kw, kb = jax.random.split(key, 3)
        x = jax.random.normal(kx, (batch, input_size), dtype=jnp.float32)
        bound = 1.0 / jnp.sqrt(jnp.float32(input_size))
        weight = jax.random.uniform(kw, (num_classes, input_size),
                                    minval=-bound, maxval=bound, dtype=jnp.float32)
        bias = jax.random.uniform(kb, (num_classes,),
                                  minval=-bound, maxval=bound, dtype=jnp.float32)
        return x, weight, bias

    k1, k2 = jax.random.split(key)

    # Case 1: small canonical shape (matches the module's typical use).
    x, weight, bias = make_case(k1, batch=8, input_size=32, num_classes=8)
    w_pad, b_pad = prepare_params(weight, bias)          # one-time, model-load
    out = jax.block_until_ready(logistic_regression_forward(x, w_pad, b_pad, 8))
    ref = jax.nn.softmax(x @ weight.T + bias, axis=1)
    assert out.shape == (8, 8)
    assert jnp.allclose(out, ref, atol=1e-5, rtol=1e-5)
    assert jnp.allclose(jnp.sum(out, axis=1), 1.0, atol=1e-5)

    # Case 2: exercises the >=2 grid-step split, the partial batch tile and class padding.
    x2, weight2, bias2 = make_case(k2, batch=20, input_size=64, num_classes=10)
    w_pad2, b_pad2 = prepare_params(weight2, bias2)
    out2 = jax.block_until_ready(logistic_regression_forward(x2, w_pad2, b_pad2, 10))
    ref2 = jax.nn.softmax(x2 @ weight2.T + bias2, axis=1)
    assert out2.shape == (20, 10)
    assert jnp.allclose(out2, ref2, atol=1e-5, rtol=1e-5)
    assert jnp.allclose(jnp.sum(out2, axis=1), 1.0, atol=1e-5)

    print("KERNEL_OK")
</pallas_src>

<mosaic_0001>
module attributes {stable_mosaic.version = 11 : i64} {
  func.func @logreg_kernel(%arg0: i32, %arg1: i32, %arg2: memref<8x32xf32, #tpu.memory_space<vmem>>, %arg3: memref<32x128xf32, #tpu.memory_space<vmem>>, %arg4: memref<1x128xf32, #tpu.memory_space<vmem>>, %arg5: memref<8x8xf32, #tpu.memory_space<vmem>>, %arg6: memref<8x128xf32, #tpu.memory_space<vmem>>) attributes {dimension_semantics = [#tpu.dimension_semantics<parallel>, #tpu.dimension_semantics<arbitrary>], iteration_bounds = array<i64: 1, 1>, scalar_prefetch = 0 : i64, scratch_operands = 1 : i64, tpu.core_type = #tpu.core_type<tc>, window_params = [{transform_indices = @transform_0, window_bounds = array<i64: 8, 32>}, {pipeline_mode = #tpu.pipeline_mode<synchronous>, transform_indices = @transform_1, window_bounds = array<i64: 32, 128>}, {pipeline_mode = #tpu.pipeline_mode<synchronous>, transform_indices = @transform_2, window_bounds = array<i64: 1, 128>}, {transform_indices = @transform_3, window_bounds = array<i64: 8, 8>}]} {
    %c0_i32 = arith.constant 0 : i32
    %0 = arith.cmpi eq, %arg1, %c0_i32 : i32
    %1 = arith.extui %0 : i1 to i32
    %c0_i32_0 = arith.constant 0 : i32
    %2 = arith.cmpi ne, %1, %c0_i32_0 : i32
    scf.if %2 {
      %cst_10 = arith.constant 0.000000e+00 : f32
      %12 = vector.broadcast %cst_10 : f32 to vector<8x128xf32>
      %c0_11 = arith.constant 0 : index
      %c0_12 = arith.constant 0 : index
      %13 = vector.load %arg6[%c0_11, %c0_12] : memref<8x128xf32, #tpu.memory_space<vmem>>, vector<8x128xf32>
      tpu.vector_store %arg6[%c0_11, %c0_12], %12 {strides = array<i32>} : memref<8x128xf32, #tpu.memory_space<vmem>>, vector<8x128xf32>,
    } else {
    }
    %c0 = arith.constant 0 : index
    %c0_1 = arith.constant 0 : index
    %3 = vector.load %arg6[%c0, %c0_1] : memref<8x128xf32, #tpu.memory_space<vmem>>, vector<8x128xf32>
    %c0_2 = arith.constant 0 : index
    %c0_3 = arith.constant 0 : index
    %4 = vector.load %arg2[%c0_2, %c0_3] : memref<8x32xf32, #tpu.memory_space<vmem>>, vector<8x32xf32>
    %c0_4 = arith.constant 0 : index
    %c0_5 = arith.constant 0 : index
    %5 = vector.load %arg3[%c0_4, %c0_5] : memref<32x128xf32, #tpu.memory_space<vmem>>, vector<32x128xf32>
    %cst = arith.constant dense<0.000000e+00> : vector<8x128xf32>
    %6 = tpu.matmul %4, %5, %cst {dimension_numbers = #tpu.dot_dimension_numbers<[1], [0], [0], [1], [0, 0, 1, 1], [], []>} : vector<8x32xf32>, vector<32x128xf32>, vector<8x128xf32> -> vector<8x128xf32>
    %7 = arith.addf %3, %6 : vector<8x128xf32>
    %c0_6 = arith.constant 0 : index
    %c0_7 = arith.constant 0 : index
    %8 = vector.load %arg6[%c0_6, %c0_7] : memref<8x128xf32, #tpu.memory_space<vmem>>, vector<8x128xf32>
    tpu.vector_store %arg6[%c0_6, %c0_7], %7 {strides = array<i32>} : memref<8x128xf32, #tpu.memory_space<vmem>>, vector<8x128xf32>,
    %c0_i32_8 = arith.constant 0 : i32
    %9 = arith.cmpi eq, %arg1, %c0_i32_8 : i32
    %10 = arith.extui %9 : i1 to i32
    %c0_i32_9 = arith.constant 0 : i32
    %11 = arith.cmpi ne, %10, %c0_i32_9 : i32
    scf.if %11 {
      %c0_10 = arith.constant 0 : index
      %c0_11 = arith.constant 0 : index
      %12 = vector.load %arg6[%c0_10, %c0_11] : memref<8x128xf32, #tpu.memory_space<vmem>>, vector<8x128xf32>
      %c0_12 = arith.constant 0 : index
      %c0_13 = arith.constant 0 : index
      %13 = vector.load %arg4[%c0_12, %c0_13] : memref<1x128xf32, #tpu.memory_space<vmem>>, vector<1x128xf32>
      %14 = vector.broadcast %13 : vector<1x128xf32> to vector<8x128xf32>
      %15 = arith.addf %12, %14 : vector<8x128xf32>
      %16 = tpu.iota {dimensions = array<i32: 1>} : vector<8x128xi32>
      %c8_i32 = arith.constant 8 : i32
      %17 = vector.broadcast %c8_i32 : i32 to vector<8x128xi32>
      %18 = arith.cmpi slt, %16, %17 : vector<8x128xi32>
      %cst_14 = arith.constant -3.40282347E+38 : f32
      %19 = vector.broadcast %cst_14 : f32 to vector<8x128xf32>
      %20 = arith.select %18, %15, %19 : vector<8x128xi1>, vector<8x128xf32>
      %cst_15 = arith.constant dense<0xFF800000> : vector<8xf32>
      %21 = vector.multi_reduction <maximumf>, %20, %cst_15 [1] : vector<8x128xf32> to vector<8xf32>
      %22 = vector.shape_cast %21 : vector<8xf32> to vector<8x1xf32>
      %23 = vector.broadcast %22 : vector<8x1xf32> to vector<8x128xf32>
      %24 = arith.subf %20, %23 : vector<8x128xf32>
      %25 = math.exp %24 : vector<8x128xf32>
      %cst_16 = arith.constant dense<0.000000e+00> : vector<8xf32>
      %26 = vector.multi_reduction <add>, %25, %cst_16 [1] : vector<8x128xf32> to vector<8xf32>
      %27 = vector.shape_cast %26 : vector<8xf32> to vector<8x1xf32>
      %28 = tpu.reciprocal %27 {approx = true} : vector<8x1xf32> -> vector<8x1xf32>
      %29 = arith.mulf %27, %28 : vector<8x1xf32>
      %cst_17 = arith.constant 2.000000e+00 : f32
      %30 = vector.broadcast %cst_17 : f32 to vector<8x1xf32>
      %31 = arith.subf %30, %29 : vector<8x1xf32>
      %32 = arith.mulf %28, %31 : vector<8x1xf32>
      %33 = vector.broadcast %32 : vector<8x1xf32> to vector<8x128xf32>
      %34 = arith.mulf %25, %33 : vector<8x128xf32>
      %35 = vector.extract_strided_slice %34 {offsets = [0, 0], sizes = [8, 8], strides = [1, 1]} : vector<8x128xf32> to vector<8x8xf32>
      %c0_18 = arith.constant 0 : index
      %c0_19 = arith.constant 0 : index
      %36 = vector.load %arg5[%c0_18, %c0_19] : memref<8x8xf32, #tpu.memory_space<vmem>>, vector<8x8xf32>
      tpu.vector_store %arg5[%c0_18, %c0_19], %35 {strides = array<i32>} : memref<8x8xf32, #tpu.memory_space<vmem>>, vector<8x8xf32>,
    } else {
    }
    return
  }
  func.func @transform_0(%arg0: i32, %arg1: i32) -> (i32, i32) {
    %c0_i32 = arith.constant 0 : i32
    return %arg0, %arg1 : i32, i32
  }
  func.func @transform_1(%arg0: i32, %arg1: i32) -> (i32, i32) {
    %c0_i32 = arith.constant 0 : i32
    %c0_i32_0 = arith.constant 0 : i32
    return %arg1, %c0_i32 : i32, i32
  }
  func.func @transform_2(%arg0: i32, %arg1: i32) -> (i32, i32) {
    %c0_i32 = arith.constant 0 : i32
    %c0_i32_0 = arith.constant 0 : i32
    %c0_i32_1 = arith.constant 0 : i32
    return %c0_i32, %c0_i32_0 : i32, i32
  }
  func.func @transform_3(%arg0: i32, %arg1: i32) -> (i32, i32) {
    %c0_i32 = arith.constant 0 : i32
    %c0_i32_0 = arith.constant 0 : i32
    return %arg0, %c0_i32 : i32, i32
  }
}

module attributes {stable_mosaic.version = 11 : i64} {
  func.func @logreg_kernel(%arg0: i32, %arg1: i32, %arg2: memref<8x32xf32, #tpu.memory_space<vmem>>, %arg3: memref<32x128xf32, #tpu.memory_space<vmem>>, %arg4: memref<1x128xf32, #tpu.memory_space<vmem>>, %arg5: memref<8x8xf32, #tpu.memory_space<vmem>>, %arg6: memref<8x128xf32, #tpu.memory_space<vmem>>) attributes {dimension_semantics = [#tpu.dimension_semantics<parallel>, #tpu.dimension_semantics<arbitrary>], iteration_bounds = array<i64: 1, 1>, scalar_prefetch = 0 : i64, scratch_operands = 1 : i64, tpu.core_type = #tpu.core_type<tc>, window_params = [{transform_indices = @transform_0, window_bounds = array<i64: 8, 32>}, {transform_indices = @transform_1, window_bounds = array<i64: 32, 128>}, {pipeline_mode = #tpu.pipeline_mode<synchronous>, transform_indices = @transform_2, window_bounds = array<i64: 1, 128>}, {transform_indices = @transform_3, window_bounds = array<i64: 8, 8>}]} {
    %c0_i32 = arith.constant 0 : i32
    %0 = arith.cmpi eq, %arg1, %c0_i32 : i32
    %1 = arith.extui %0 : i1 to i32
    %c0_i32_0 = arith.constant 0 : i32
    %2 = arith.cmpi ne, %1, %c0_i32_0 : i32
    scf.if %2 {
      %cst_10 = arith.constant 0.000000e+00 : f32
      %12 = vector.broadcast %cst_10 : f32 to vector<8x128xf32>
      %c0_11 = arith.constant 0 : index
      %c0_12 = arith.constant 0 : index
      %13 = vector.load %arg6[%c0_11, %c0_12] : memref<8x128xf32, #tpu.memory_space<vmem>>, vector<8x128xf32>
      tpu.vector_store %arg6[%c0_11, %c0_12], %12 {strides = array<i32>} : memref<8x128xf32, #tpu.memory_space<vmem>>, vector<8x128xf32>,
    } else {
    }
    %c0 = arith.constant 0 : index
    %c0_1 = arith.constant 0 : index
    %3 = vector.load %arg6[%c0, %c0_1] : memref<8x128xf32, #tpu.memory_space<vmem>>, vector<8x128xf32>
    %c0_2 = arith.constant 0 : index
    %c0_3 = arith.constant 0 : index
    %4 = vector.load %arg2[%c0_2, %c0_3] : memref<8x32xf32, #tpu.memory_space<vmem>>, vector<8x32xf32>
    %c0_4 = arith.constant 0 : index
    %c0_5 = arith.constant 0 : index
    %5 = vector.load %arg3[%c0_4, %c0_5] : memref<32x128xf32, #tpu.memory_space<vmem>>, vector<32x128xf32>
    %cst = arith.constant dense<0.000000e+00> : vector<8x128xf32>
    %6 = tpu.matmul %4, %5, %cst {dimension_numbers = #tpu.dot_dimension_numbers<[1], [0], [0], [1], [0, 0, 1, 1], [], []>} : vector<8x32xf32>, vector<32x128xf32>, vector<8x128xf32> -> vector<8x128xf32>
    %7 = arith.addf %3, %6 : vector<8x128xf32>
    %c0_6 = arith.constant 0 : index
    %c0_7 = arith.constant 0 : index
    %8 = vector.load %arg6[%c0_6, %c0_7] : memref<8x128xf32, #tpu.memory_space<vmem>>, vector<8x128xf32>
    tpu.vector_store %arg6[%c0_6, %c0_7], %7 {strides = array<i32>} : memref<8x128xf32, #tpu.memory_space<vmem>>, vector<8x128xf32>,
    %c0_i32_8 = arith.constant 0 : i32
    %9 = arith.cmpi eq, %arg1, %c0_i32_8 : i32
    %10 = arith.extui %9 : i1 to i32
    %c0_i32_9 = arith.constant 0 : i32
    %11 = arith.cmpi ne, %10, %c0_i32_9 : i32
    scf.if %11 {
      %c0_10 = arith.constant 0 : index
      %c0_11 = arith.constant 0 : index
      %12 = vector.load %arg6[%c0_10, %c0_11] : memref<8x128xf32, #tpu.memory_space<vmem>>, vector<8x128xf32>
      %c0_12 = arith.constant 0 : index
      %c0_13 = arith.constant 0 : index
      %13 = vector.load %arg4[%c0_12, %c0_13] : memref<1x128xf32, #tpu.memory_space<vmem>>, vector<1x128xf32>
      %14 = vector.broadcast %13 : vector<1x128xf32> to vector<8x128xf32>
      %15 = arith.addf %12, %14 : vector<8x128xf32>
      %16 = tpu.iota {dimensions = array<i32: 1>} : vector<8x128xi32>
      %c8_i32 = arith.constant 8 : i32
      %17 = vector.broadcast %c8_i32 : i32 to vector<8x128xi32>
      %18 = arith.cmpi slt, %16, %17 : vector<8x128xi32>
      %cst_14 = arith.constant -3.40282347E+38 : f32
      %19 = vector.broadcast %cst_14 : f32 to vector<8x128xf32>
      %20 = arith.select %18, %15, %19 : vector<8x128xi1>, vector<8x128xf32>
      %cst_15 = arith.constant dense<0xFF800000> : vector<8xf32>
      %21 = vector.multi_reduction <maximumf>, %20, %cst_15 [1] : vector<8x128xf32> to vector<8xf32>
      %22 = vector.shape_cast %21 : vector<8xf32> to vector<8x1xf32>
      %23 = vector.broadcast %22 : vector<8x1xf32> to vector<8x128xf32>
      %24 = arith.subf %20, %23 : vector<8x128xf32>
      %25 = math.exp %24 : vector<8x128xf32>
      %cst_16 = arith.constant dense<0.000000e+00> : vector<8xf32>
      %26 = vector.multi_reduction <add>, %25, %cst_16 [1] : vector<8x128xf32> to vector<8xf32>
      %27 = vector.shape_cast %26 : vector<8xf32> to vector<8x1xf32>
      %28 = tpu.reciprocal %27 {approx = true} : vector<8x1xf32> -> vector<8x1xf32>
      %29 = arith.mulf %27, %28 : vector<8x1xf32>
      %cst_17 = arith.constant 2.000000e+00 : f32
      %30 = vector.broadcast %cst_17 : f32 to vector<8x1xf32>
      %31 = arith.subf %30, %29 : vector<8x1xf32>
      %32 = arith.mulf %28, %31 : vector<8x1xf32>
      %33 = vector.broadcast %32 : vector<8x1xf32> to vector<8x128xf32>
      %34 = arith.mulf %25, %33 : vector<8x128xf32>
      %35 = vector.extract_strided_slice %34 {offsets = [0, 0], sizes = [8, 8], strides = [1, 1]} : vector<8x128xf32> to vector<8x8xf32>
      %c0_18 = arith.constant 0 : index
      %c0_19 = arith.constant 0 : index
      %36 = vector.load %arg5[%c0_18, %c0_19] : memref<8x8xf32, #tpu.memory_space<vmem>>, vector<8x8xf32>
      tpu.vector_store %arg5[%c0_18, %c0_19], %35 {strides = array<i32>} : memref<8x8xf32, #tpu.memory_space<vmem>>, vector<8x8xf32>,
    } else {
    }
    return
  }
  func.func @transform_0(%arg0: i32, %arg1: i32) -> (i32, i32) {
    %c0_i32 = arith.constant 0 : i32
    return %arg0, %arg1 : i32, i32
  }
  func.func @transform_1(%arg0: i32, %arg1: i32) -> (i32, i32) {
    %c0_i32 = arith.constant 0 : i32
    %c0_i32_0 = arith.constant 0 : i32
    return %arg1, %c0_i32 : i32, i32
  }
  func.func @transform_2(%arg0: i32, %arg1: i32) -> (i32, i32) {
    %c0_i32 = arith.constant 0 : i32
    %c0_i32_0 = arith.constant 0 : i32
    %c0_i32_1 = arith.constant 0 : i32
    return %c0_i32, %c0_i32_0 : i32, i32
  }
  func.func @transform_3(%arg0: i32, %arg1: i32) -> (i32, i32) {
    %c0_i32 = arith.constant 0 : i32
    %c0_i32_0 = arith.constant 0 : i32
    return %arg0, %c0_i32 : i32, i32
  }
}

</mosaic_0001>

<bundles_post_ra>
// kernel: tpu_custom_call.1
= control target key start
LH: loop header
LB: loop body
LE: loop exit
PB: predicated region body
PF: predicated region fallthrough
CT: control target
= control target key end

     0   :  { %8 = vsyncpa [#allocation4], 0  ;;  %s253_s0 = inlined_call_operand.hbm [shape: f32[8,32], index: 0, kind: input, shape index: {}]   ;;  %s254_s1 = inlined_call_operand.hbm [shape: f32[32,128], index: 1, kind: input, shape index: {}]   ;;  %s255_s2 = inlined_call_operand.vmem [shape: f32[1,128], index: 2, kind: input, shape index: {}]   ;;  %s256_s3 = inlined_call_operand.hbm [shape: f32[8,8], index: 3, kind: output, shape index: {}]  }
   0x1   :  { %9 = vsyncpa [#allocation7], 0 }
   0x2   :  { %10 = vsyncpa [#allocation5], 0  ;;  %s16_s14 = sshll.u32 %s253_s0, 4  ;;  %s216_s15 = smov [#allocation3]   ;;  %s17_s14 = int_to_ptr.hbm [resolvable:$true] %s16_s14 }
   0x3   :  { %s18_s16 = sshll.u32 %s216_s15, 4  ;;  %s26_s19 = sshll.u32 %s254_s1, 4  ;;  %s19_s16 = int_to_ptr.vmem [resolvable:$true] %s18_s16  ;;  %s27_s19 = int_to_ptr.hbm [resolvable:$true] %s26_s19 }
   0x4   :  { %21 = dma.hbm_to_vmem [thread:$0]  %s17_s14, 128, %s19_s16, [#allocation4]  }
   0x5   :  { %s217_s20 = smov [#allocation6]   ;;  %s218_s22 = smov 128  }
   0x6   :  { %s28_s21 = sshll.u32 %s217_s20, 4  ;;  %s219_s23 = smov 8   ;;  %s29_s21 = int_to_ptr.vmem [resolvable:$true] %s28_s21 }
   0x7   :  { %34 = dma.hbm_to_vmem [thread:$0]  %s27_s19, 512, %s29_s21, [#allocation7], %s218_s22, %s218_s22, %s219_s23  }
   0x8   :  { %210 = dma.done.wait [#allocation4], 128  }
   0x9   :  { %211 = vsyncadd [#allocation4], 4294967168 }
   0xa   :  { %212 = dma.done.wait [#allocation7], 512  }
   0xb   :  { %213 = vsyncadd [#allocation7], 4294966784  ;;  %v55_v0 = vld [vmem:[#allocation6 + $0x18] sm:$0xff]  ;;  %v54_v1 = vld [vmem:[#allocation6 + $0x10] sm:$0xff]  ;;  %vm56_vm0 = vcmask 261120   ;;  %v91_v5 = vlaneseq  ;;  %s220_s24 = smov [#allocation8]  }
   0xc   :  { %72 = vmatpush.msra.mxu0 %v55_v0  ;;  %v53_v2 = vld [vmem:[#allocation6 + $0x8] sm:$0xff]  ;;  %v52_v3 = vld [vmem:[#allocation6] sm:$0xff]  ;;  %v51_v4 = vld [vmem:[#allocation3] sm:$0xff]  ;;  %s114_s25 = sshll.u32 %s220_s24, 4  ;;  %s116_s27 = sshll.u32 %s256_s3, 4  ;;  %vm107_vm2 = vcmask 64512   ;;  %s115_s25 = int_to_ptr.vmem [resolvable:$true] %s114_s25  ;;  %s117_s27 = int_to_ptr.hbm [resolvable:$true] %s116_s27 }
   0xd   :  { %v92_v6 = vand.u32 127, %v91_v5  ;;  %v133_v7 = vld [vmem:[%s255_s2] ss:$0 sm:$0xff] }
   0xe   :  { %73 = vmatpush.msra.mxu0 %v54_v1 }
   0xf   :  { %vm93_vm1 = vcmp.lt.s32.totalorder %v92_v6, 8 }
  0x10   :  { %74 = vmatpush.msra.mxu0 %v53_v2 }
  0x12   :  { %75 = vmatpush.msra.mxu0 %v52_v3 }
  0x13   :  { %127 = vmatmul.msk.f32.vlgmr.msra.gmra.mxu0 %vm56_vm0, %v51_v4 }
  0x90   :  { %v77_v8 = vpop.f32.mrf.mxu0 }
  0x91   :  { %v90_v9 = vadd.f32 %v133_v7, %v77_v8 }
  0x93   :  { %v94_v10 = vsel %vm93_vm1, %v90_v9, -3.4028235e+38 }
  0x94   :  { %95 = vmax.xlane.f32.xlu0 %v94_v10 }
 0x107   :  { %v96_v11 = vpop.xlane.xlu0 %95 }
 0x108   :  { %v97_v12 = vsub.f32 %v94_v10, %v96_v11 }
 0x10a   :  { %v98_v13 = vmul.f32 1.442695, %v97_v12 }
 0x10c   :  { %134 = vpow2.f32 %v98_v13 }
 0x112   :  { %v135_v14 = vpop.eup %134 }
 0x113   :  { %100 = vadd.xlane.f32.xlu0 %v135_v14 }
 0x186   :  { %v101_v15 = vpop.xlane.xlu0 %100 }
 0x187   :  { %136 = vrcp.f32 %v101_v15 }
 0x18d   :  { %v137_v16 = vpop.eup %136 }
 0x18e   :  { %v103_v17 = vmul.f32 %v137_v16, %v101_v15 }
 0x190   :  { %v104_v18 = vsub.f32 2.0, %v103_v17 }
 0x192   :  { %v105_v19 = vmul.f32 %v137_v16, %v104_v18 }
 0x194   :  { %v106_v20 = vmul.f32 %v135_v14, %v105_v19 }
 0x196   :  { %108 = vst.msk [vmem:[#allocation8] sm:$0xff] %vm107_vm2, %v106_v20 }
 0x197   :  { %119 = dma.vmem_to_hbm [thread:$0]  %s115_s25, 128, %s117_s27, [#allocation5]  }
 0x198   :  { %214 = dma.done.wait [#allocation5], 128  }
 0x199   :  { %215 = vsyncadd [#allocation5], 4294967168 }
 0x19a   :  { %124 = vsyncpa [#allocation4], 1 }
 0x19b   :  { %125 = vsyncpa [#allocation7], 1 }
 0x19c   :  { %126 = vsyncpa [#allocation5], 1 }

// kernel: tpu_custom_call.1
= control target key start
LH: loop header
LB: loop body
LE: loop exit
PB: predicated region body
PF: predicated region fallthrough
CT: control target
= control target key end

     0   :  { %8 = vsyncpa [#allocation4], 0  ;;  %s253_s0 = inlined_call_operand.hbm [shape: f32[8,32], index: 0, kind: input, shape index: {}]   ;;  %s254_s1 = inlined_call_operand.hbm [shape: f32[32,128], index: 1, kind: input, shape index: {}]   ;;  %s255_s2 = inlined_call_operand.vmem [shape: f32[1,128], index: 2, kind: input, shape index: {}]   ;;  %s256_s3 = inlined_call_operand.hbm [shape: f32[8,8], index: 3, kind: output, shape index: {}]  }
   0x1   :  { %9 = vsyncpa [#allocation7], 0 }
   0x2   :  { %10 = vsyncpa [#allocation5], 0  ;;  %s16_s14 = sshll.u32 %s253_s0, 4  ;;  %s216_s15 = smov [#allocation3]   ;;  %s17_s14 = int_to_ptr.hbm [resolvable:$true] %s16_s14 }
   0x3   :  { %s18_s16 = sshll.u32 %s216_s15, 4  ;;  %s26_s19 = sshll.u32 %s254_s1, 4  ;;  %s19_s16 = int_to_ptr.vmem [resolvable:$true] %s18_s16  ;;  %s27_s19 = int_to_ptr.hbm [resolvable:$true] %s26_s19 }
   0x4   :  { %21 = dma.hbm_to_vmem [thread:$0]  %s17_s14, 128, %s19_s16, [#allocation4]  }
   0x5   :  { %s217_s20 = smov [#allocation6]   ;;  %s218_s22 = smov 128  }
   0x6   :  { %s28_s21 = sshll.u32 %s217_s20, 4  ;;  %s219_s23 = smov 8   ;;  %s29_s21 = int_to_ptr.vmem [resolvable:$true] %s28_s21 }
   0x7   :  { %34 = dma.hbm_to_vmem [thread:$0]  %s27_s19, 512, %s29_s21, [#allocation7], %s218_s22, %s218_s22, %s219_s23  }
   0x8   :  { %210 = dma.done.wait [#allocation4], 128  }
   0x9   :  { %211 = vsyncadd [#allocation4], 4294967168 }
   0xa   :  { %212 = dma.done.wait [#allocation7], 512  }
   0xb   :  { %213 = vsyncadd [#allocation7], 4294966784  ;;  %v55_v0 = vld [vmem:[#allocation6 + $0x18] sm:$0xff]  ;;  %v54_v1 = vld [vmem:[#allocation6 + $0x10] sm:$0xff]  ;;  %vm56_vm0 = vcmask 261120   ;;  %v91_v5 = vlaneseq  ;;  %s220_s24 = smov [#allocation8]  }
   0xc   :  { %72 = vmatpush.msra.mxu0 %v55_v0  ;;  %v53_v2 = vld [vmem:[#allocation6 + $0x8] sm:$0xff]  ;;  %v52_v3 = vld [vmem:[#allocation6] sm:$0xff]  ;;  %v51_v4 = vld [vmem:[#allocation3] sm:$0xff]  ;;  %s114_s25 = sshll.u32 %s220_s24, 4  ;;  %s116_s27 = sshll.u32 %s256_s3, 4  ;;  %vm107_vm2 = vcmask 64512   ;;  %s115_s25 = int_to_ptr.vmem [resolvable:$true] %s114_s25  ;;  %s117_s27 = int_to_ptr.hbm [resolvable:$true] %s116_s27 }
   0xd   :  { %v92_v6 = vand.u32 127, %v91_v5  ;;  %v133_v7 = vld [vmem:[%s255_s2] ss:$0 sm:$0xff] }
   0xe   :  { %73 = vmatpush.msra.mxu0 %v54_v1 }
   0xf   :  { %vm93_vm1 = vcmp.lt.s32.totalorder %v92_v6, 8 }
  0x10   :  { %74 = vmatpush.msra.mxu0 %v53_v2 }
  0x12   :  { %75 = vmatpush.msra.mxu0 %v52_v3 }
  0x13   :  { %127 = vmatmul.msk.f32.vlgmr.msra.gmra.mxu0 %vm56_vm0, %v51_v4 }
  0x90   :  { %v77_v8 = vpop.f32.mrf.mxu0 }
  0x91   :  { %v90_v9 = vadd.f32 %v133_v7, %v77_v8 }
  0x93   :  { %v94_v10 = vsel %vm93_vm1, %v90_v9, -3.4028235e+38 }
  0x94   :  { %95 = vmax.xlane.f32.xlu0 %v94_v10 }
 0x107   :  { %v96_v11 = vpop.xlane.xlu0 %95 }
 0x108   :  { %v97_v12 = vsub.f32 %v94_v10, %v96_v11 }
 0x10a   :  { %v98_v13 = vmul.f32 1.442695, %v97_v12 }
 0x10c   :  { %134 = vpow2.f32 %v98_v13 }
 0x112   :  { %v135_v14 = vpop.eup %134 }
 0x113   :  { %100 = vadd.xlane.f32.xlu0 %v135_v14 }
 0x186   :  { %v101_v15 = vpop.xlane.xlu0 %100 }
 0x187   :  { %136 = vrcp.f32 %v101_v15 }
 0x18d   :  { %v137_v16 = vpop.eup %136 }
 0x18e   :  { %v103_v17 = vmul.f32 %v137_v16, %v101_v15 }
 0x190   :  { %v104_v18 = vsub.f32 2.0, %v103_v17 }
 0x192   :  { %v105_v19 = vmul.f32 %v137_v16, %v104_v18 }
 0x194   :  { %v106_v20 = vmul.f32 %v135_v14, %v105_v19 }
 0x196   :  { %108 = vst.msk [vmem:[#allocation8] sm:$0xff] %vm107_vm2, %v106_v20 }
 0x197   :  { %119 = dma.vmem_to_hbm [thread:$0]  %s115_s25, 128, %s117_s27, [#allocation5]  }
 0x198   :  { %214 = dma.done.wait [#allocation5], 128  }
 0x199   :  { %215 = vsyncadd [#allocation5], 4294967168 }
 0x19a   :  { %124 = vsyncpa [#allocation4], 1 }
 0x19b   :  { %125 = vsyncpa [#allocation7], 1 }
 0x19c   :  { %126 = vsyncpa [#allocation5], 1 }

</bundles_post_ra>
